<compile_context>
chip_gen: v6e
topology: v6e:2x2x1
jax: 0.10.0
libtpu: 0.0.40
codegen_flags: <defaults>
</compile_context>

<pallas_src>
import functools

import jax
import jax.numpy as jnp
from jax import lax
from jax.experimental import pallas as pl
from jax.experimental.pallas import tpu as pltpu  # noqa: F401  (TPU backend)


# --------------------------------------------------------------------------
# Shared in-kernel MLP, feature-major layout.
#   y   : (2, B)   state, batch on the 128-lane axis
#   w1  : (H, 2),  b1 : (H, 1)
#   w2  : (H, H),  b2 : (H, 1)
#   w3t : (H, 2),  b3 : (2, 1)
# returns dy : (2, B)
# --------------------------------------------------------------------------
def _mlp_feature_major(y, w1, b1, w2, b2, w3t, b3):
    # Layer 1 (K = 2): two VPU broadcast multiply-adds, skip the MXU.
    h1 = jnp.tanh(w1[:, 0:1] * y[0:1, :] + w1[:, 1:2] * y[1:2, :] + b1)      # (H, B)
    # Layer 2 (H x H): MXU matmul with f32 accumulation.
    h2 = jnp.tanh(jnp.dot(w2, h1, preferred_element_type=jnp.float32) + b2)  # (H, B)
    # Layer 3 (2 outputs): VPU multiply + sublane (XLU) reduce, skip the MXU.
    o0 = jnp.sum(w3t[:, 0:1] * h2, axis=0, keepdims=True)                    # (1, B)
    o1 = jnp.sum(w3t[:, 1:2] * h2, axis=0, keepdims=True)                    # (1, B)
    return jnp.concatenate([o0, o1], axis=0) + b3                            # (2, B)


def _odefunc_kernel(y_ref, w1_ref, b1_ref, w2_ref, b2_ref, w3t_ref, b3_ref, o_ref):
    out = _mlp_feature_major(
        y_ref[...], w1_ref[...], b1_ref[...], w2_ref[...],
        b2_ref[...], w3t_ref[...], b3_ref[...],
    )
    o_ref[...] = out.astype(o_ref.dtype)


def _euler_kernel(n_steps, dt,
                  y_ref, w1_ref, b1_ref, w2_ref, b2_ref, w3t_ref, b3_ref, o_ref):
    """N explicit-Euler steps fused into one kernel; weights stay in VMEM."""
    w1, b1 = w1_ref[...], b1_ref[...]
    w2, b2 = w2_ref[...], b2_ref[...]
    w3t, b3 = w3t_ref[...], b3_ref[...]

    def body(_, y):
        return y + dt * _mlp_feature_major(y, w1, b1, w2, b2, w3t, b3)

    y_final = lax.fori_loop(0, n_steps, body, y_ref[...].astype(jnp.float32))
    o_ref[...] = y_final.astype(o_ref.dtype)


# --------------------------------------------------------------------------
# Wrappers
# --------------------------------------------------------------------------
def _full_block(a):
    # Full-array VMEM block (arrays are tiny; no tiling / grid needed).
    return pl.BlockSpec(a.shape, lambda: (0,) * a.ndim)


def _cost(B, H, n_steps=1):
    flops = n_steps * 2 * B * (2 * H + H * H + 2 * H)
    transcendentals = n_steps * 2 * H * B
    bytes_accessed = 4 * (2 * B + (H * 2 + H) + (H * H + H) + (H * 2 + 2) + 2 * B)
    return pl.CostEstimate(flops=flops, transcendentals=transcendentals,
                           bytes_accessed=bytes_accessed)


def odefunc_forward(t, y, params):
    """Pallas forward pass of ODEFunc.  y:(batch,2) -> dy:(batch,2).  t unused."""
    del t
    w1, b1, w2, b2, w3t, b3 = params
    B = y.shape[0]
    H = w1.shape[0]
    y_fm = y.T  # (2, B): feature-major, batch on the lane axis (layout plumbing)

    out_fm = pl.pallas_call(
        _odefunc_kernel,
        out_shape=jax.ShapeDtypeStruct((2, B), y.dtype),
        grid=(),
        in_specs=[_full_block(a) for a in (y_fm, w1, b1, w2, b2, w3t, b3)],
        out_specs=pl.BlockSpec((2, B), lambda: (0, 0)),
        cost_estimate=_cost(B, H),
    )(y_fm, w1, b1, w2, b2, w3t, b3)
    return out_fm.T  # back to (batch, 2)


def odefunc_integrate(y0, params, *, dt, n_steps):
    """Fused fixed-step Euler integration: n_steps forward evals, ONE pallas_call."""
    w1, b1, w2, b2, w3t, b3 = params
    B = y0.shape[0]
    H = w1.shape[0]
    y_fm = y0.T  # (2, B)

    kernel = functools.partial(_euler_kernel, int(n_steps), float(dt))
    out_fm = pl.pallas_call(
        kernel,
        out_shape=jax.ShapeDtypeStruct((2, B), y0.dtype),
        grid=(),
        in_specs=[_full_block(a) for a in (y_fm, w1, b1, w2, b2, w3t, b3)],
        out_specs=pl.BlockSpec((2, B), lambda: (0, 0)),
        cost_estimate=_cost(B, H, n_steps=int(n_steps)),
    )(y_fm, w1, b1, w2, b2, w3t, b3)
    return out_fm.T  # (batch, 2)


# --------------------------------------------------------------------------
# Params + pure-JAX references
# --------------------------------------------------------------------------
def init_params(key, hidden_dim, dtype=jnp.float32):
    """PyTorch-style uniform(+/- 1/sqrt(fan_in)) init, stored feature-major:
       w1:(H,2), b1:(H,1), w2:(H,H), b2:(H,1), w3t:(H,2), b3:(2,1)."""
    H = hidden_dim
    specs = [
        ((H, 2), (H, 1), 2),   # Linear(2, H)
        ((H, H), (H, 1), H),   # Linear(H, H)
        ((2, H), (2, 1), H),   # Linear(H, 2)
    ]
    params = []
    for (w_shape, b_shape, fan_in) in specs:
        key, kw, kb = jax.random.split(key, 3)
        bound = 1.0 / float(fan_in) ** 0.5
        w = jax.random.uniform(kw, w_shape, dtype, -bound, bound)
        b = jax.random.uniform(kb, b_shape, dtype, -bound, bound)
        params.extend([w, b])
    w1, b1, w2, b2, w3, b3 = params
    return (w1, b1, w2, b2, w3.T, b3)  # layer-3 weight stored as (H, 2)


def odefunc_reference(t, y, params):
    """Pure-JAX reference (batch-major, standard Linear semantics)."""
    del t
    w1, b1, w2, b2, w3t, b3 = params
    h1 = jnp.tanh(y @ w1.T + b1.T)
    h2 = jnp.tanh(h1 @ w2.T + b2.T)
    return h2 @ w3t + b3.T


def integrate_reference(y0, params, dt, n_steps):
    def body(_, y):
        return y + dt * odefunc_reference(0.0, y, params)
    return lax.fori_loop(0, n_steps, body, y0)


# --------------------------------------------------------------------------
if __name__ == "__main__":
    hidden_dim = 32
    batch = 128  # batch sits on the 128-lane axis -> lane-dense activations

    key = jax.random.PRNGKey(0)
    key, ky = jax.random.split(key)
    params = init_params(key, hidden_dim)

    y = jax.random.normal(ky, (batch, 2), jnp.float32)  # state vectors (q, p)
    t = jnp.float32(0.0)                                # unused (autonomous)

    # --- single forward pass (module semantics) ---
    out = jax.block_until_ready(odefunc_forward(t, y, params))
    ref = odefunc_reference(t, y, params)
    assert out.shape == (batch, 2)
    assert jnp.allclose(out, ref, atol=1e-5, rtol=1e-5), "forward mismatch vs reference"

    # --- fused multi-step integration (launch amortization) ---
    n_steps, dt = 16, 0.05
    yT = jax.block_until_ready(odefunc_integrate(y, params, dt=dt, n_steps=n_steps))
    yT_ref = integrate_reference(y, params, dt, n_steps)
    assert yT.shape == (batch, 2)
    assert jnp.allclose(yT, yT_ref, atol=1e-4, rtol=1e-4), "fused integrator mismatch"

    print("KERNEL_OK")
</pallas_src>

<mosaic_0001>
module attributes {stable_mosaic.version = 11 : i64} {
  func.func @_odefunc_kernel(%arg0: memref<2x128xf32, #tpu.memory_space<vmem>>, %arg1: memref<32x2xf32, #tpu.memory_space<vmem>>, %arg2: memref<32x1xf32, #tpu.memory_space<vmem>>, %arg3: memref<32x32xf32, #tpu.memory_space<vmem>>, %arg4: memref<32x1xf32, #tpu.memory_space<vmem>>, %arg5: memref<32x2xf32, #tpu.memory_space<vmem>>, %arg6: memref<2x1xf32, #tpu.memory_space<vmem>>, %arg7: memref<2x128xf32, #tpu.memory_space<vmem>>) attributes {dimension_semantics = [], scalar_prefetch = 0 : i64, scratch_operands = 0 : i64, tpu.core_type = #tpu.core_type<tc>} {
    %c0 = arith.constant 0 : index
    %c0_0 = arith.constant 0 : index
    %0 = vector.load %arg0[%c0, %c0_0] : memref<2x128xf32, #tpu.memory_space<vmem>>, vector<2x128xf32>
    %c0_1 = arith.constant 0 : index
    %c0_2 = arith.constant 0 : index
    %1 = vector.load %arg1[%c0_1, %c0_2] : memref<32x2xf32, #tpu.memory_space<vmem>>, vector<32x2xf32>
    %c0_3 = arith.constant 0 : index
    %c0_4 = arith.constant 0 : index
    %2 = vector.load %arg2[%c0_3, %c0_4] : memref<32x1xf32, #tpu.memory_space<vmem>>, vector<32x1xf32>
    %c0_5 = arith.constant 0 : index
    %c0_6 = arith.constant 0 : index
    %3 = vector.load %arg3[%c0_5, %c0_6] : memref<32x32xf32, #tpu.memory_space<vmem>>, vector<32x32xf32>
    %c0_7 = arith.constant 0 : index
    %c0_8 = arith.constant 0 : index
    %4 = vector.load %arg4[%c0_7, %c0_8] : memref<32x1xf32, #tpu.memory_space<vmem>>, vector<32x1xf32>
    %c0_9 = arith.constant 0 : index
    %c0_10 = arith.constant 0 : index
    %5 = vector.load %arg5[%c0_9, %c0_10] : memref<32x2xf32, #tpu.memory_space<vmem>>, vector<32x2xf32>
    %c0_11 = arith.constant 0 : index
    %c0_12 = arith.constant 0 : index
    %6 = vector.load %arg6[%c0_11, %c0_12] : memref<2x1xf32, #tpu.memory_space<vmem>>, vector<2x1xf32>
    %7 = vector.extract_strided_slice %1 {offsets = [0, 0], sizes = [32, 1], strides = [1, 1]} : vector<32x2xf32> to vector<32x1xf32>
    %8 = vector.extract_strided_slice %0 {offsets = [0, 0], sizes = [1, 128], strides = [1, 1]} : vector<2x128xf32> to vector<1x128xf32>
    %9 = vector.broadcast %7 : vector<32x1xf32> to vector<32x128xf32>
    %10 = vector.broadcast %8 : vector<1x128xf32> to vector<32x128xf32>
    %11 = arith.mulf %9, %10 : vector<32x128xf32>
    %12 = vector.extract_strided_slice %1 {offsets = [0, 1], sizes = [32, 1], strides = [1, 1]} : vector<32x2xf32> to vector<32x1xf32>
    %13 = vector.extract_strided_slice %0 {offsets = [1, 0], sizes = [1, 128], strides = [1, 1]} : vector<2x128xf32> to vector<1x128xf32>
    %14 = vector.broadcast %12 : vector<32x1xf32> to vector<32x128xf32>
    %15 = vector.broadcast %13 : vector<1x128xf32> to vector<32x128xf32>
    %16 = arith.mulf %14, %15 : vector<32x128xf32>
    %17 = arith.addf %11, %16 : vector<32x128xf32>
    %18 = vector.broadcast %2 : vector<32x1xf32> to vector<32x128xf32>
    %19 = arith.addf %17, %18 : vector<32x128xf32>
    %20 = math.tanh %19 : vector<32x128xf32>
    %cst = arith.constant dense<0.000000e+00> : vector<32x128xf32>
    %21 = tpu.matmul %3, %20, %cst {dimension_numbers = #tpu.dot_dimension_numbers<[1], [0], [0], [1], [0, 0, 1, 1], [], []>} : vector<32x32xf32>, vector<32x128xf32>, vector<32x128xf32> -> vector<32x128xf32>
    %22 = vector.broadcast %4 : vector<32x1xf32> to vector<32x128xf32>
    %23 = arith.addf %21, %22 : vector<32x128xf32>
    %24 = math.tanh %23 : vector<32x128xf32>
    %25 = vector.extract_strided_slice %5 {offsets = [0, 0], sizes = [32, 1], strides = [1, 1]} : vector<32x2xf32> to vector<32x1xf32>
    %26 = vector.broadcast %25 : vector<32x1xf32> to vector<32x128xf32>
    %27 = arith.mulf %26, %24 : vector<32x128xf32>
    %cst_13 = arith.constant dense<0.000000e+00> : vector<128xf32>
    %28 = vector.multi_reduction <add>, %27, %cst_13 [0] : vector<32x128xf32> to vector<128xf32>
    %29 = vector.shape_cast %28 : vector<128xf32> to vector<1x128xf32>
    %30 = vector.extract_strided_slice %5 {offsets = [0, 1], sizes = [32, 1], strides = [1, 1]} : vector<32x2xf32> to vector<32x1xf32>
    %31 = vector.broadcast %30 : vector<32x1xf32> to vector<32x128xf32>
    %32 = arith.mulf %31, %24 : vector<32x128xf32>
    %cst_14 = arith.constant dense<0.000000e+00> : vector<128xf32>
    %33 = vector.multi_reduction <add>, %32, %cst_14 [0] : vector<32x128xf32> to vector<128xf32>
    %34 = vector.shape_cast %33 : vector<128xf32> to vector<1x128xf32>
    %35 = tpu.concatenate %29, %34 in 0 : vector<1x128xf32>, vector<1x128xf32> -> vector<2x128xf32>
    %36 = vector.broadcast %6 : vector<2x1xf32> to vector<2x128xf32>
    %37 = arith.addf %35, %36 : vector<2x128xf32>
    %c0_15 = arith.constant 0 : index
    %c0_16 = arith.constant 0 : index
    %38 = vector.load %arg7[%c0_15, %c0_16] : memref<2x128xf32, #tpu.memory_space<vmem>>, vector<2x128xf32>
    tpu.vector_store %arg7[%c0_15, %c0_16], %37 {strides = array<i32>} : memref<2x128xf32, #tpu.memory_space<vmem>>, vector<2x128xf32>,
    return
  }
}

</mosaic_0001>

<bundles_post_ra>
// kernel: tpu_custom_call.1
= control target key start
LH: loop header
LB: loop body
LE: loop exit
PB: predicated region body
PF: predicated region fallthrough
CT: control target
= control target key end

     0   :  { %v426_v2 = vmov 1   ;;  %v427_v3 = vmov 0   ;;  %s542_s0 = inlined_call_operand.vmem [shape: f32[2,128], index: 0, kind: input, shape index: {}]   ;;  %s543_s1 = inlined_call_operand.vmem [shape: f32[32,2], index: 1, kind: input, shape index: {}]   ;;  %s544_s2 = inlined_call_operand.vmem [shape: f32[32,1], index: 2, kind: input, shape index: {}]   ;;  %s545_s3 = inlined_call_operand.vmem [shape: f32[32,32], index: 3, kind: input, shape index: {}]   ;;  %s546_s4 = inlined_call_operand.vmem [shape: f32[32,1], index: 4, kind: input, shape index: {}]   ;;  %s547_s5 = inlined_call_operand.vmem [shape: f32[32,2], index: 5, kind: input, shape index: {}]   ;;  %s548_s6 = inlined_call_operand.vmem [shape: f32[2,1], index: 6, kind: input, shape index: {}]   ;;  %s549_s7 = inlined_call_operand.hbm [shape: f32[2,128], index: 7, kind: output, shape index: {}]  }
   0x1   :  { %v31_v0 = vld [vmem:[%s543_s1 + $0x18] sm:$0xff]  ;;  %v30_v1 = vld [vmem:[%s543_s1 + $0x10] sm:$0xff]  ;;  %377 = vset.pattern.permute.xlu0 %v426_v2  ;;  %378 = vset.pattern.permute.xlu1 %v427_v3  ;;  %v29_v4 = vld [vmem:[%s543_s1 + $0x8] sm:$0xff] }
   0x2   :  { %90 = vperm.xlu0 %377, %v31_v0   ;;  %61 = vperm.xlu1 %378, %v30_v1  }
   0x3   :  { %12 = vsyncpa [#allocation3], 0  ;;  %v28_v5 = vld [vmem:[%s543_s1] sm:$0xff]  ;;  %v35_v6 = vld [vmem:[%s544_s2 + $0x18] sm:$0xff]  ;;  %vm153_vm0 = vcmask 261120   ;;  %v69_v21 = vlaneseq  ;;  %vm317_vm1 = vcmask 1040384  }
   0x4   :  { %v33_v7 = vld [vmem:[%s544_s2 + $0x8] sm:$0xff]  ;;  %v40_v8 = vld [vmem:[%s546_s4] sm:$0xff]  ;;  %v34_v9 = vld [vmem:[%s544_s2 + $0x10] sm:$0xff] }
   0x5   :  { %v42_v10 = vld [vmem:[%s546_s4 + $0x10] sm:$0xff]  ;;  %v32_v11 = vld [vmem:[%s544_s2] sm:$0xff]  ;;  %v41_v13 = vld [vmem:[%s546_s4 + $0x8] sm:$0xff]  ;;  %v70_v22 = vshrl.u32 %v69_v21, 7 }
   0x6   :  { %379 = vset.pattern.permute.xlu1 %v426_v2  ;;  %82 = vperm.xlu0 %377, %v29_v4   ;;  %v44_v12 = vld [vmem:[%s547_s5] sm:$0xff]  ;;  %v43_v14 = vld [vmem:[%s546_s4 + $0x18] sm:$0xff]  ;;  %v45_v15 = vld [vmem:[%s547_s5 + $0x8] sm:$0xff] }
   0x7   :  { %86 = vperm.xlu1 %379, %v30_v1   ;;  %v36_v16 = vld [vmem:[%s545_s3] sm:$0xff]  ;;  %v38_v17 = vld [vmem:[%s545_s3 + $0x10] sm:$0xff]  ;;  %v47_v19 = vld [vmem:[%s547_s5 + $0x18] sm:$0xff]  ;;  %v95_v25 = vsub.s32 1, %v70_v22  ;;  %v71_v26 = vsub.s32 0, %v70_v22 }
   0x8   :  { %360 = vmatprep.mubr.msk.f32.mxu0 %vm153_vm0, %v36_v16  ;;  %363 = vmatprep.mubr.msk.f32.mxu1 %vm153_vm0, %v38_v17  ;;  %v46_v18 = vld [vmem:[%s547_s5 + $0x10] sm:$0xff]  ;;  %v48_v20 = vld [vmem:[%s548_s6] sm:$0x3]  ;;  %v37_v60 = vld [vmem:[%s545_s3 + $0x8] sm:$0xff] }
   0x9   :  { %v27_v28 = vld [vmem:[%s542_s0] sm:$0x3]  ;;  %v39_v61 = vld [vmem:[%s545_s3 + $0x18] sm:$0xff]  ;;  %s428_s3 = smov [#allocation2]  }
   0xa   :  { %381 = vset.pattern.permute.xlu0 %v427_v3  ;;  %v96_v30 = vrot.slane %v27_v28, %v95_v25  ;;  %v72_v31 = vrot.slane %v27_v28, %v71_v26  ;;  %s332_s1 = sshll.u32 %s428_s3, 4  ;;  %s333_s1 = int_to_ptr.vmem [resolvable:$true] %s332_s1 }
   0xb   :  { %380 = vset.pattern.permute.xlu1 %v427_v3  ;;  %66 = vperm.xlu0 %381, %v31_v0   ;;  %s404_s16 = scalar_lea.vmem %s333_s1, 32  ;;  %p409_p1 = scmp.lt.s32.totalorder %s333_s1, %s333_s1 }
   0xc   :  { %56 = vperm.xlu1 %380, %v29_v4   ;;  %p405_p0 = scmp.ne.s32.totalorder %s333_s1, %s404_s16  ;;  %p410_p2 = scmp.lt.s32.totalorder %s404_s16, %s404_s16 }
   0xe   :  { %p411_p3 = por %p410_p2, %p409_p1 }
   0xf   :  { %51 = vperm.xlu0 %381, %v28_v5  }
  0x10   :  { %122 = vperm.xlu1 %380, %v35_v6   ;;  %p412_p4 = pnand %p411_p3, %p405_p0 }
  0x13   :  { %112 = vperm.xlu0 %381, %v33_v7  }
  0x14   :  { %382 = vset.pattern.permute.xlu1 %v426_v2 }
  0x15   :  { %78 = vperm.xlu1 %382, %v28_v5  }
  0x17   :  { %135 = vperm.xlu0 %381, %v40_v8  }
  0x19   :  { %383 = vset.pattern.permute.xlu1 %v427_v3 }
  0x1a   :  { %117 = vperm.xlu1 %383, %v34_v9  }
  0x1b   :  { %145 = vperm.xlu0 %381, %v42_v10  }
  0x1e   :  { %107 = vperm.xlu1 %383, %v32_v11  }
  0x1f   :  { %257 = vperm.xlu0 %381, %v44_v12  }
  0x22   :  { %140 = vperm.xlu1 %383, %v41_v13  }
  0x23   :  { %384 = vset.pattern.permute.xlu0 %v426_v2 }
  0x24   :  { %289 = vperm.xlu0 %384, %v44_v12  }
  0x26   :  { %150 = vperm.xlu1 %383, %v43_v14  }
  0x28   :  { %297 = vperm.xlu0 %384, %v46_v18  }
  0x2a   :  { %262 = vperm.xlu1 %383, %v45_v15  }
  0x2c   :  { %301 = vperm.xlu0 %384, %v47_v19  }
  0x2e   :  { %385 = vset.pattern.permute.xlu1 %v426_v2 }
  0x2f   :  { %293 = vperm.xlu1 %385, %v45_v15  }
  0x30   :  { %387 = vset.pattern.permute.xlu0 %v427_v3 }
  0x33   :  { %386 = vset.pattern.permute.xlu1 %v427_v3 }
  0x34   :  { %267 = vperm.xlu1 %386, %v46_v18  }
  0x38   :  { %272 = vperm.xlu1 %386, %v47_v19  }
  0x3c   :  { %321 = vperm.xlu1 %386, %v48_v20  }
  0x7d   :  { %v62_v23 = vpop.permute.xlu1 %61  ;;  %v91_v24 = vpop.permute.xlu0 %90 }
  0x7e   :  { %v100_v32 = vmul.f32 %v96_v30, %v91_v24  ;;  %v75_v44 = vmul.f32 %v72_v31, %v62_v23 }
  0x81   :  { %v83_v27 = vpop.permute.xlu0 %82 }
  0x82   :  { %v87_v29 = vpop.permute.xlu1 %86  ;;  %v98_v41 = vmul.f32 %v96_v30, %v83_v27 }
  0x83   :  { %v99_v40 = vmul.f32 %v96_v30, %v87_v29 }
  0x85   :  { %v103_v49 = vadd.f32 %v99_v40, %v75_v44 }
  0x86   :  { %v67_v33 = vpop.permute.xlu0 %66 }
  0x87   :  { %v76_v34 = vmul.f32 %v72_v31, %v67_v33  ;;  %v57_v35 = vpop.permute.xlu1 %56 }
  0x88   :  { %v74_v42 = vmul.f32 %v72_v31, %v57_v35 }
  0x89   :  { %v104_v36 = vadd.f32 %v100_v32, %v76_v34 }
  0x8a   :  { %v52_v39 = vpop.permute.xlu0 %51  ;;  %v102_v47 = vadd.f32 %v98_v41, %v74_v42 }
  0x8b   :  { %v123_v37 = vpop.permute.xlu1 %122  ;;  %v73_v46 = vmul.f32 %v72_v31, %v52_v39 }
  0x8c   :  { %v128_v38 = vadd.f32 %v123_v37, %v104_v36 }
  0x8e   :  { %388 = vtanh.f32 %v128_v38  ;;  %v113_v45 = vpop.permute.xlu0 %112 }
  0x8f   :  { %v126_v51 = vadd.f32 %v113_v45, %v102_v47 }
  0x90   :  { %v79_v43 = vpop.permute.xlu1 %78 }
  0x91   :  { %v97_v48 = vmul.f32 %v96_v30, %v79_v43 }
  0x92   :  { %v136_v62 = vpop.permute.xlu0 %135 }
  0x93   :  { %v101_v53 = vadd.f32 %v97_v48, %v73_v46 }
  0x95   :  { %v118_v50 = vpop.permute.xlu1 %117 }
  0x96   :  { %v127_v52 = vadd.f32 %v118_v50, %v103_v49  ;;  %v146_v0 = vpop.permute.xlu0 %145 }
  0x98   :  { %390 = vtanh.f32 %v127_v52 }
  0x99   :  { %v108_v54 = vpop.permute.xlu1 %107  ;;  %392 = vtanh.f32 %v126_v51 }
  0x9a   :  { %v125_v55 = vadd.f32 %v108_v54, %v101_v53  ;;  %v258_v10 = vpop.permute.xlu0 %257 }
  0x9b   :  { %v389_v56 = vpop.eup %388 }
  0x9c   :  { %394 = vtanh.f32 %v125_v55  ;;  %352 = vmatprep.subr.mxu0 %v389_v56  ;;  %366 = vmatprep.subr.mxu1 %v389_v56 }
  0x9d   :  { %353 = vmatpush3.msra.mxu0 %v389_v56  ;;  %370 = vmatpush3.msra.mxu1 %v389_v56  ;;  %v141_v63 = vpop.permute.xlu1 %140 }
  0x9f   :  { %v290_v13 = vpop.permute.xlu0 %289 }
  0xa1   :  { %v151_v1 = vpop.permute.xlu1 %150 }
  0xa3   :  { %v298_v16 = vpop.permute.xlu0 %297 }
  0xa5   :  { %v391_v57 = vpop.eup %390  ;;  %v263_v11 = vpop.permute.xlu1 %262 }
  0xa6   :  { %354 = vmatprep.subr.mxu0 %v391_v57  ;;  %367 = vmatprep.subr.mxu1 %v391_v57  ;;  %v393_v58 = vpop.eup %392 }
  0xa7   :  { %355 = vmatpush3.msra.mxu0 %v391_v57  ;;  %371 = vmatpush3.msra.mxu1 %v391_v57  ;;  %v302_v29 = vpop.permute.xlu0 %301 }
  0xa8   :  { %356 = vmatprep.subr.mxu0 %v393_v58  ;;  %368 = vmatprep.subr.mxu1 %v393_v58 }
  0xa9   :  { %v395_v59 = vpop.eup %394  ;;  %357 = vmatpush3.msra.mxu0 %v393_v58  ;;  %372 = vmatpush3.msra.mxu1 %v393_v58 }
  0xaa   :  { %358 = vmatprep.subr.mxu0 %v395_v59  ;;  %369 = vmatprep.subr.mxu1 %v395_v59  ;;  %v294_v12 = vpop.permute.xlu1 %293 }
  0xab   :  { %359 = vmatpush3.msra.mxu0 %v395_v59  ;;  %373 = vmatpush3.msra.mxu1 %v395_v59 }
  0xac   :  { %361 = vmatmul.mubr.msk.f32.vlgmr.msra.gmra.mxu0 %vm153_vm0, %v37_v60  ;;  %364 = vmatmul.mubr.msk.f32.vlgmr.msra.gmra.mxu1 %vm153_vm0, %v39_v61 }
  0xaf   :  { %v268_v15 = vpop.permute.xlu1 %267 }
  0xb3   :  { %v273_v28 = vpop.permute.xlu1 %272 }
  0xb7   :  { %v322_v48 = vpop.permute.xlu1 %321 }
 0x16c   :  { %v362_v2 = vpop.f32.mrf.mxu0  ;;  %v365_v3 = vpop.f32.mrf.mxu1 }
 0x16d   :  { %v238_v4 = vadd.f32 %v362_v2, %v141_v63  ;;  %v248_v7 = vadd.f32 %v365_v3, %v151_v1 }
 0x16e   :  { %v232_v5 = vpop.f32.mrf.mxu0  ;;  %v242_v6 = vpop.f32.mrf.mxu1 }
 0x16f   :  { %396 = vtanh.f32 %v238_v4  ;;  %v233_v8 = vadd.f32 %v232_v5, %v136_v62  ;;  %v243_v9 = vadd.f32 %v242_v6, %v146_v0 }
 0x171   :  { %398 = vtanh.f32 %v233_v8 }
 0x172   :  { %400 = vtanh.f32 %v243_v9 }
 0x173   :  { %402 = vtanh.f32 %v248_v7 }
 0x17c   :  { %v397_v14 = vpop.eup %396 }
 0x17d   :  { %v305_v19 = vmul.f32 %v397_v14, %v294_v12  ;;  %v276_v22 = vmul.f32 %v397_v14, %v263_v11 }
 0x17e   :  { %v399_v17 = vpop.eup %398 }
 0x17f   :  { %v401_v18 = vpop.eup %400  ;;  %v304_v20 = vmul.f32 %v399_v17, %v290_v13  ;;  %v275_v21 = vmul.f32 %v399_v17, %v258_v10 }
 0x180   :  { %v403_v23 = vpop.eup %402  ;;  %v277_v25 = vmul.f32 %v401_v18, %v268_v15  ;;  %v306_v27 = vmul.f32 %v401_v18, %v298_v16 }
 0x181   :  { %v308_v24 = vadd.f32 %v305_v19, %v304_v20  ;;  %v279_v26 = vadd.f32 %v276_v22, %v275_v21  ;;  %v278_v32 = vmul.f32 %v403_v23, %v273_v28  ;;  %v307_v33 = vmul.f32 %v403_v23, %v302_v29 }
 0x183   :  { %v280_v30 = vadd.f32 %v279_v26, %v277_v25  ;;  %v309_v31 = vadd.f32 %v308_v24, %v306_v27 }
 0x185   :  { %v281_v34 = vadd.f32 %v280_v30, %v278_v32  ;;  %v310_v35 = vadd.f32 %v309_v31, %v307_v33 }
 0x187   :  { %v282_v36 = vrot.slane %v281_v34, 4  ;;  %v311_v37 = vrot.slane %v310_v35, 4 }
 0x189   :  { %v283_v38 = vadd.f32 %v282_v36, %v281_v34  ;;  %v312_v39 = vadd.f32 %v311_v37, %v310_v35 }
 0x18b   :  { %v284_v40 = vrot.slane %v283_v38, 2  ;;  %v313_v41 = vrot.slane %v312_v39, 2 }
 0x18d   :  { %v285_v42 = vadd.f32 %v284_v40, %v283_v38  ;;  %v314_v43 = vadd.f32 %v313_v41, %v312_v39 }
 0x18f   :  { %v286_v44 = vrot.slane %v285_v42, 1  ;;  %v315_v45 = vrot.slane %v314_v43, 1 }
 0x191   :  { %v287_v46 = vadd.f32 %v286_v44, %v285_v42  ;;  %v316_v47 = vadd.f32 %v315_v45, %v314_v43 }
 0x193   :  { %v318_v49 = vsel %vm317_vm1, %v287_v46, %v316_v47 }
 0x194   :  { %v324_v50 = vadd.f32 %v322_v48, %v318_v49 }
 0x196   :  { %325 = vst [vmem:[#allocation2] sm:$0x3] %v324_v50 }
 0x197   :  { %415 = shalt.err (!%p412_p4)
}
 0x198   :  { %335 = dma.vmem_to_hbm [thread:$0]  %s333_s1, 32, %s549_s7, [#allocation3]  }
 0x199   :  { %424 = dma.done.wait [#allocation3], 32  }
 0x19a   :  { %425 = vsyncadd [#allocation3], 4294967264 }
 0x19b   :  { %339 = vsyncpa [#allocation3], 1 }

</bundles_post_ra>
